<compile_context>
chip_gen: v7x
topology: tpu7x:2x2x1
jax: 0.10.0
libtpu: 0.0.40
codegen_flags: <defaults>
</compile_context>

<pallas_src>
import functools

import jax
import jax.numpy as jnp
from jax.experimental import pallas as pl
from jax.experimental.pallas import tpu as pltpu


def _patch_embed_kernel(p_ref, w_ref, b_ref, o_ref):
    """(row_tile, K) patch rows @ (K, te) weights, + bias, lane-dense (row_tile, te) out."""
    acc = jnp.dot(p_ref[...], w_ref[...], preferred_element_type=jnp.float32)
    o_ref[...] = (acc + b_ref[...]).astype(o_ref.dtype)


def _round_up(x, m):
    return ((x + m - 1) // m) * m


def _pick_embed_tile(embed_dim):
    """Largest lane-dense (multiple-of-128) tile dividing embed_dim, else the full dim."""
    if embed_dim % 128 == 0:
        for te in (512, 384, 256, 128):
            if te <= embed_dim and embed_dim % te == 0:
                return te
    return embed_dim  # full-extent block is always legal


def linear_patch_embedding(x, weight, bias, patch_size, *,
                           row_tile=256, matmul_dtype=jnp.bfloat16):
    """Forward pass of LinearPatchEmbedding.

    x:       (B, C, H, W, D) float32
    weight:  (embed_dim, K)   with K = C * p1 * p2 * p3   (PyTorch nn.Linear layout)
    bias:    (embed_dim,)
    returns: (B, N_patches, embed_dim) float32, N_patches = (H/p1)*(W/p2)*(D/p3)
    """
    B, C, H, W, D = x.shape
    P1, P2, P3 = patch_size
    h, w, d = H // P1, W // P2, D // P3
    N = h * w * d
    K = P1 * P2 * P3 * C
    E, Kw = weight.shape
    assert Kw == K, (Kw, K)

    # einops Rearrange: 'b c (h p1) (w p2) (d p3) -> b (h w d) (p1 p2 p3 c)'
    # Non-overlapping patches => a single size-preserving transpose (done by XLA),
    # after which the kernel reads contiguous (row_tile, K) slabs.
    xr = x.reshape(B, C, h, P1, w, P2, d, P3)
    xr = jnp.transpose(xr, (0, 2, 4, 6, 3, 5, 7, 1))        # b h w d p1 p2 p3 c
    patches = xr.reshape(B * N, K)

    # Flatten batch*patches into one row axis and pad to the row tile.
    M = B * N
    tm = min(row_tile, _round_up(M, 8))
    Mp = _round_up(M, tm)
    if Mp != M:
        patches = jnp.pad(patches, ((0, Mp - M), (0, 0)))

    patches = patches.astype(matmul_dtype)
    w_ke = weight.T.astype(matmul_dtype)                     # (K, E) -> lane-dense out
    b_row = bias.reshape(1, E).astype(jnp.float32)

    te = _pick_embed_tile(E)
    grid = (Mp // tm, E // te)

    out = pl.pallas_call(
        _patch_embed_kernel,
        out_shape=jax.ShapeDtypeStruct((Mp, E), jnp.float32),
        grid_spec=pl.GridSpec(
            grid=grid,
            in_specs=[
                pl.BlockSpec((tm, K), lambda i, j: (i, 0)),   # patch rows (K untiled: small)
                pl.BlockSpec((K, te), lambda i, j: (0, j)),   # weights
                pl.BlockSpec((1, te), lambda i, j: (0, j)),   # bias row
            ],
            out_specs=pl.BlockSpec((tm, te), lambda i, j: (i, j)),
        ),
        compiler_params=pltpu.CompilerParams(
            # No reduction axis -> everything parallel; shards across v7x's 2 TensorCores.
            dimension_semantics=("parallel", "parallel"),
            # Tiles are tiny (double-buffered patch + out tiles + weights << 32 MiB),
            # well under v7x's 64 MiB physical VMEM.
            vmem_limit_bytes=32 * 1024 * 1024,
        ),
    )(patches, w_ke, b_row)

    return out[:M].reshape(B, N, E)


def linear_patch_embedding_ref(x, weight, bias, patch_size):
    """Pure-JAX reference (mirrors the PyTorch module exactly, f32)."""
    B, C, H, W, D = x.shape
    P1, P2, P3 = patch_size
    h, w, d = H // P1, W // P2, D // P3
    xr = x.reshape(B, C, h, P1, w, P2, d, P3)
    xr = jnp.transpose(xr, (0, 2, 4, 6, 3, 5, 7, 1))
    patches = xr.reshape(B, h * w * d, P1 * P2 * P3 * C)
    return patches @ weight.T + bias


if __name__ == "__main__":
    # Small shapes consistent with the module: 3D volume input (B, C, H, W, D).
    B, C = 2, 4
    H = W = D = 16
    patch_size = (2, 2, 2)
    embed_dim = 128
    K = C * patch_size[0] * patch_size[1] * patch_size[2]   # 32

    key = jax.random.PRNGKey(0)
    kx, kw, kb = jax.random.split(key, 3)
    x = jax.random.normal(kx, (B, C, H, W, D), jnp.float32)
    # PyTorch nn.Linear layout: weight (embed_dim, K), bias (embed_dim,)
    weight = (1.0 / (K ** 0.5)) * jax.random.normal(kw, (embed_dim, K), jnp.float32)
    bias = 0.01 * jax.random.normal(kb, (embed_dim,), jnp.float32)

    fwd = jax.jit(functools.partial(linear_patch_embedding, patch_size=patch_size))
    out = jax.block_until_ready(fwd(x, weight, bias))

    N = (H // patch_size[0]) * (W // patch_size[1]) * (D // patch_size[2])
    assert out.shape == (B, N, embed_dim), (out.shape, (B, N, embed_dim))
    assert bool(jnp.all(jnp.isfinite(out)))

    ref = linear_patch_embedding_ref(x, weight, bias, patch_size)
    max_err = float(jnp.max(jnp.abs(out - ref)))
    # bf16 matmul inputs with f32 accumulation: comfortably within 2e-2.
    assert max_err < 2e-2, max_err

    print("KERNEL_OK")
</pallas_src>

<mosaic_0001>
module attributes {stable_mosaic.version = 11 : i64} {
  func.func @_patch_embed_kernel(%arg0: i32, %arg1: i32, %arg2: memref<256x32xbf16, #tpu.memory_space<vmem>>, %arg3: memref<32x128xbf16, #tpu.memory_space<vmem>>, %arg4: memref<1x128xf32, #tpu.memory_space<vmem>>, %arg5: memref<256x128xf32, #tpu.memory_space<vmem>>) attributes {dimension_semantics = [#tpu.dimension_semantics<parallel>, #tpu.dimension_semantics<parallel>], iteration_bounds = array<i64: 4, 1>, scalar_prefetch = 0 : i64, scratch_operands = 0 : i64, tpu.core_type = #tpu.core_type<tc>, window_params = [{transform_indices = @transform_0, window_bounds = array<i64: 256, 32>}, {transform_indices = @transform_1, window_bounds = array<i64: 32, 128>}, {transform_indices = @transform_2, window_bounds = array<i64: 1, 128>}, {transform_indices = @transform_3, window_bounds = array<i64: 256, 128>}]} {
    %c0 = arith.constant 0 : index
    %c0_0 = arith.constant 0 : index
    %0 = vector.load %arg2[%c0, %c0_0] : memref<256x32xbf16, #tpu.memory_space<vmem>>, vector<256x32xbf16>
    %c0_1 = arith.constant 0 : index
    %c0_2 = arith.constant 0 : index
    %1 = vector.load %arg3[%c0_1, %c0_2] : memref<32x128xbf16, #tpu.memory_space<vmem>>, vector<32x128xbf16>
    %cst = arith.constant dense<0.000000e+00> : vector<256x128xf32>
    %2 = tpu.matmul %0, %1, %cst {dimension_numbers = #tpu.dot_dimension_numbers<[1], [0], [0], [1], [0, 0, 1, 1], [], []>} : vector<256x32xbf16>, vector<32x128xbf16>, vector<256x128xf32> -> vector<256x128xf32>
    %c0_3 = arith.constant 0 : index
    %c0_4 = arith.constant 0 : index
    %3 = vector.load %arg4[%c0_3, %c0_4] : memref<1x128xf32, #tpu.memory_space<vmem>>, vector<1x128xf32>
    %4 = vector.broadcast %3 : vector<1x128xf32> to vector<256x128xf32>
    %5 = arith.addf %2, %4 : vector<256x128xf32>
    %c0_5 = arith.constant 0 : index
    %c0_6 = arith.constant 0 : index
    %6 = vector.load %arg5[%c0_5, %c0_6] : memref<256x128xf32, #tpu.memory_space<vmem>>, vector<256x128xf32>
    tpu.vector_store %arg5[%c0_5, %c0_6], %5 {strides = array<i32>} : memref<256x128xf32, #tpu.memory_space<vmem>>, vector<256x128xf32>,
    return
  }
  func.func @transform_0(%arg0: i32, %arg1: i32) -> (i32, i32) {
    %c0_i32 = arith.constant 0 : i32
    %c0_i32_0 = arith.constant 0 : i32
    return %arg0, %c0_i32 : i32, i32
  }
  func.func @transform_1(%arg0: i32, %arg1: i32) -> (i32, i32) {
    %c0_i32 = arith.constant 0 : i32
    %c0_i32_0 = arith.constant 0 : i32
    return %c0_i32, %arg1 : i32, i32
  }
  func.func @transform_2(%arg0: i32, %arg1: i32) -> (i32, i32) {
    %c0_i32 = arith.constant 0 : i32
    %c0_i32_0 = arith.constant 0 : i32
    return %c0_i32, %arg1 : i32, i32
  }
  func.func @transform_3(%arg0: i32, %arg1: i32) -> (i32, i32) {
    %c0_i32 = arith.constant 0 : i32
    return %arg0, %arg1 : i32, i32
  }
}

</mosaic_0001>

<bundles_post_ra>
// kernel: linear_patch_embedding.1
= control target key start
LH: loop header
LB: loop body
LE: loop exit
PB: predicated region body
PF: predicated region fallthrough
CT: control target
= control target key end

     0   :  { %8 = vsyncpa [#allocation3], 0  ;;  %s1226_s0 = inlined_call_operand.vmem [shape: bf16[1024,32], index: 0, kind: input, shape index: {}]   ;;  %s1227_s1 = inlined_call_operand.vmem [shape: bf16[32,128], index: 1, kind: input, shape index: {}]   ;;  %s1228_s2 = inlined_call_operand.vmem [shape: f32[1,128], index: 2, kind: input, shape index: {}]   ;;  %s1229_s3 = inlined_call_operand.hbm [shape: f32[1024,128], index: 3, kind: output, shape index: {}]  }
   0x1   :  { %10 = vsyncpa [#allocation3 + $0x1], 0  ;;  %s996_s12 = smov 0   ;;  %s998_s13 = smov 0  }
   0x2   :  { %s1000_s14 = smov 0   ;;  %s1002_s15 = smov 0  }
   0x3   :  { %s1004_s16 = smov 0   ;;  %s1006_s17 = smov 0  }
   0x4 LB: > { %s709_s18 = sadd.s32 4294967295, %s971_s17   ;;  %s710_s19 = sadd.s32 4294967294, %s971_s17   ;;  %s971_s17 = sphi %s1006_s17, %s16_s17   ;;  %s967_s16 = sphi %s1004_s16, %s1236_s16   ;;  %s963_s15 = sphi %s1002_s15, %s1235_s15   ;;  %s959_s14 = sphi %s1000_s14, %s1234_s14   ;;  %s955_s13 = sphi %s998_s13, %s1233_s13   ;;  %s951_s12 = sphi %s996_s12, %s1232_s12  }
   0x5   : > { %s28_s20 = sadd.s32 1, %s967_s16  ;;  %s115_s21 = sadd.s32 1, %s959_s14 }
   0x6   : > { %p30_p0 = scmp.ge.s32.totalorder %s28_s20, 4  ;;  %p125_p1 = scmp.ne.s32.totalorder %s959_s14, %s955_s13 }
   0x7   : > { %p126_p2 = scmp.eq.s32.totalorder %s709_s18, 3  ;;  %p131_p3 = scmp.ne.s32.totalorder %s955_s13, %s951_s12 }
   0x8   : > { %s1238_s20 = smov (%p30_p0, %s28_s20), 0  ;;  %p132_p5 = scmp.eq.s32.totalorder %s710_s19, 3 }
   0x9   : > { %p1036_p4 = por %p126_p2, %p125_p1  ;;  %s110_s23 = ssub.s32 %s967_s16, %s1238_s20 }
   0xa   : > { %p715_p6 = scmp.ge.s32.totalorder %s971_s17, 1  ;;  %p113_p7 = scmp.eq.s32.totalorder %s110_s23, 0 }
   0xb   : > { %p1043_p8 = por %p132_p5, %p131_p3  ;;  %p172_p9 = scmp.lt.s32.totalorder %s971_s17, 5 }
   0xc   : > { %s1049_s25 = scalar_select %p113_p7, %s959_s14, %s115_s21  }
   0xd   : > { %p173_p10 = pnand %p715_p6, %p172_p9 }
   0xe   : > { %v875_v0 = vld [vmem:[%s1227_s1] sm:$0xff] (!%p173_p10)   ;;  %s717_s28 = sshll.u32 (!%p173_p10), %s963_s15, 5  ;;  %v876_v1 = vld [vmem:[%s1227_s1 + $0x8] sm:$0xff] (!%p173_p10)   ;;  %vm353_vm0 = vcmask (!%p173_p10), 261120   ;;  %s200_s8 = sand.u32 (!%p173_p10), 1, %s955_s13  }
   0xf   : > { %176 = sbr.rel (%p173_p10) target bundleno = 284 (0x11c), region = 32  ;;  %p204_p11 = scmp.lt.s32.totalorder (!%p173_p10), %s717_s28, 127  ;;  %778 = vmatprep.subr.bf16.mxu0 (!%p173_p10), %v875_v0  ;;  %814 = vmatprep.subr.bf16.mxu1 (!%p173_p10), %v875_v0  ;;  %v1101_v18 = vld [vmem:[%s1228_s2] ss:$0 sm:$0xff] (!%p173_p10) }
  0x10   : > { %779 = vmatpush3.bf16.msra.mxu0 (!%p173_p10), %v875_v0  ;;  %816 = vmatpush3.bf16.msra.mxu1 (!%p173_p10), %v875_v0  ;;  %s716_s9 = sshll.u32 (!%p173_p10), %s200_s8, 8  ;;  %s759_s19 = sshll.u32 (!%p173_p10), %s963_s15, 12 }
  0x11   : > { %780 = vmatprep.subr.bf16.mxu0 (!%p173_p10), %v876_v1  ;;  %815 = vmatprep.subr.bf16.mxu1 (!%p173_p10), %v876_v1  ;;  %s1106_s18 = scalar_lea.vmem (!%p173_p10), [#allocation2], %s716_s9  ;;  %s1168_s26 = scalar_lea.hbm (!%p173_p10), %s1229_s3, %s759_s19 }
  0x12   : > { %s610_s21 = sshll.u32 (!%p173_p10), %s1106_s18, 4  ;;  %s1180_s27 = scalar_lea.sflag (!%p173_p10), [#allocation3], %s200_s8  ;;  %s1170_s21 = int_to_ptr.vmem [resolvable:$true] %s610_s21 }
  0x13   : > { %s973_s29 = smov (!%p173_p10), [#allocation2]  }
  0x14   : > { %781 = vmatpush3.bf16.msra.mxu0 (!%p173_p10), %v876_v1  ;;  %817 = vmatpush3.bf16.msra.mxu1 (!%p173_p10), %v876_v1  ;;  %s897_s30 = sshll.u32 (!%p173_p10), %s973_s29, 4  ;;  %s898_s30 = int_to_ptr.vmem [resolvable:$false] %s897_s30 }
  0x15   : > { %p900_p1 = scmp.lt.s32.totalorder (!%p173_p10), %s1170_s21, %s898_s30 }
  0x16   : > { %s1240_s28 = smov (!%p204_p11, %s717_s28), 127 }
  0x17   : > { %s718_s4 = sshll.u32 %s1240_s28, 2  ;;  %s893_s28 = scalar_lea.vmem %s1170_s21, 4096 }
  0x18   : > { %s1061_s7 = scalar_lea.vmem %s1226_s0, %s718_s4  ;;  %p894_p12 = scmp.ne.s32.totalorder %s1170_s21, %s893_s28 }
  0x19   : > { %v877_v2 = vld [vmem:[%s1061_s7] sm:$0xff]   ;;  %v879_v4 = vld [vmem:[%s1061_s7 + $0x8] sm:$0xff]   ;;  %v881_v6 = vld [vmem:[%s1061_s7 + $0x10] sm:$0xff]   ;;  %s899_s4 = scalar_lea.vmem %s898_s30, 8192 }
  0x1a   : > { %v878_v3 = vld [vmem:[%s1061_s7 + $0x40] sm:$0xff]   ;;  %782 = vmatprep.mubr.msk.bf16.mxu0 %vm353_vm0, %v877_v2  ;;  %v880_v5 = vld [vmem:[%s1061_s7 + $0x48] sm:$0xff]   ;;  %v882_v7 = vld [vmem:[%s1061_s7 + $0x50] sm:$0xff]   ;;  %p895_p13 = pnand %p894_p12, %p1036_p4  ;;  %p901_p2 = scmp.lt.s32.totalorder %s899_s4, %s893_s28 }
  0x1b   : > { %798 = vmatprep.mubr.msk.bf16.mxu1 %vm353_vm0, %v878_v3  ;;  %783 = vmatmul.mubr.msk.bf16.vlgmr.msra.gmra.mrb[0].mxu0 %vm353_vm0, %v879_v4  ;;  %v883_v8 = vld [vmem:[%s1061_s7 + $0x18] sm:$0xff]   ;;  %v885_v10 = vld [vmem:[%s1061_s7 + $0x20] sm:$0xff]   ;;  %v887_v12 = vld [vmem:[%s1061_s7 + $0x28] sm:$0xff]  }
  0x1c   : > { %799 = vmatmul.mubr.msk.bf16.vlgmr.msra.gmra.mrb[0].mxu1 %vm353_vm0, %v880_v5  ;;  %786 = vmatprep.mubr.msk.bf16.mxu0 %vm353_vm0, %v881_v6  ;;  %v884_v9 = vld [vmem:[%s1061_s7 + $0x58] sm:$0xff]   ;;  %v886_v11 = vld [vmem:[%s1061_s7 + $0x60] sm:$0xff]   ;;  %v888_v13 = vld [vmem:[%s1061_s7 + $0x68] sm:$0xff]   ;;  %p896_p0 = pneg %p895_p13  ;;  %p902_p3 = por %p901_p2, %p900_p1 }
  0x1d   : > { %802 = vmatprep.mubr.msk.bf16.mxu1 %vm353_vm0, %v882_v7  ;;  %v889_v14 = vld [vmem:[%s1061_s7 + $0x30] sm:$0xff]   ;;  %v891_v16 = vld [vmem:[%s1061_s7 + $0x38] sm:$0xff]  }
  0x1e   : > { %v890_v15 = vld [vmem:[%s1061_s7 + $0x70] sm:$0xff]   ;;  %v892_v17 = vld [vmem:[%s1061_s7 + $0x78] sm:$0xff]   ;;  %p903_p5 = pnand %p902_p3, %p896_p0 }
  0x23   : > { %787 = vmatmul.mubr.msk.bf16.gmra.mrb[4].mxu0 %vm353_vm0, %v883_v8 }
  0x24   : > { %803 = vmatmul.mubr.msk.bf16.gmra.mrb[4].mxu1 %vm353_vm0, %v884_v9  ;;  %790 = vmatprep.mubr.msk.bf16.mxu0 %vm353_vm0, %v885_v10 }
  0x25   : > { %806 = vmatprep.mubr.msk.bf16.mxu1 %vm353_vm0, %v886_v11 }
  0x2b   : > { %791 = vmatmul.mubr.msk.bf16.gmra.mrb[8].mxu0 %vm353_vm0, %v887_v12 }
  0x2c   : > { %807 = vmatmul.mubr.msk.bf16.gmra.mrb[8].mxu1 %vm353_vm0, %v888_v13  ;;  %794 = vmatprep.mubr.msk.bf16.mxu0 %vm353_vm0, %v889_v14 }
  0x2d   : > { %810 = vmatprep.mubr.msk.bf16.mxu1 %vm353_vm0, %v890_v15 }
  0x33   : > { %795 = vmatmul.mubr.msk.bf16.gmra.mrb[12].mxu0 %vm353_vm0, %v891_v16 }
  0x34   : > { %811 = vmatmul.mubr.msk.bf16.gmra.mrb[12].mxu1 %vm353_vm0, %v892_v17 }
  0xee   : > { %v784_v19 = vpop.f32.mrb[0].mxu0 }
  0xef   : > { %v445_v20 = vadd.f32 %v784_v19, %v1101_v18  ;;  %v800_v21 = vpop.f32.mrb[0].mxu1  ;;  %v436_v22 = vpop.f32.mrb[1].mxu0 }
  0xf0   : > { %v509_v23 = vadd.f32 %v800_v21, %v1101_v18  ;;  %v437_v24 = vadd.f32 %v1101_v18, %v436_v22  ;;  %v500_v25 = vpop.f32.mrb[1].mxu1  ;;  %v785_v26 = vpop.f32.mrb[2].mxu0 }
  0xf1   : > { %565 = vst [vmem:[%s1106_s18 + $0x10] sm:$0xff] %v445_v20  ;;  %v501_v27 = vadd.f32 %v1101_v18, %v500_v25  ;;  %v448_v28 = vadd.f32 %v785_v26, %v1101_v18  ;;  %v801_v29 = vpop.f32.mrb[2].mxu1  ;;  %v439_v30 = vpop.f32.mrb[3].mxu0 }
  0xf2   : > { %581 = vst [vmem:[%s1106_s18 + $0x90] sm:$0xff] %v509_v23  ;;  %563 = vst [vmem:[%s1106_s18] sm:$0xff] %v437_v24  ;;  %v512_v31 = vadd.f32 %v801_v29, %v1101_v18  ;;  %v440_v32 = vadd.f32 %v1101_v18, %v439_v30  ;;  %v503_v33 = vpop.f32.mrb[3].mxu1 }
  0xf3   : > { %579 = vst [vmem:[%s1106_s18 + $0x80] sm:$0xff] %v501_v27  ;;  %566 = vst [vmem:[%s1106_s18 + $0x18] sm:$0xff] %v448_v28  ;;  %v504_v34 = vadd.f32 %v1101_v18, %v503_v33 }
  0xf4   : > { %582 = vst [vmem:[%s1106_s18 + $0x98] sm:$0xff] %v512_v31  ;;  %564 = vst [vmem:[%s1106_s18 + $0x8] sm:$0xff] %v440_v32 }
  0xf5   : > { %580 = vst [vmem:[%s1106_s18 + $0x88] sm:$0xff] %v504_v34 }
  0xf6   : > { %v788_v35 = vpop.f32.mrb[4].mxu0 }
  0xf7   : > { %v461_v36 = vadd.f32 %v788_v35, %v1101_v18  ;;  %v804_v37 = vpop.f32.mrb[4].mxu1  ;;  %v452_v38 = vpop.f32.mrb[5].mxu0 }
  0xf8   : > { %v525_v39 = vadd.f32 %v804_v37, %v1101_v18  ;;  %v453_v40 = vadd.f32 %v1101_v18, %v452_v38  ;;  %v516_v41 = vpop.f32.mrb[5].mxu1  ;;  %v789_v42 = vpop.f32.mrb[6].mxu0 }
  0xf9   : > { %569 = vst [vmem:[%s1106_s18 + $0x30] sm:$0xff] %v461_v36  ;;  %v517_v43 = vadd.f32 %v1101_v18, %v516_v41  ;;  %v464_v44 = vadd.f32 %v789_v42, %v1101_v18  ;;  %v805_v45 = vpop.f32.mrb[6].mxu1  ;;  %v455_v46 = vpop.f32.mrb[7].mxu0 }
  0xfa   : > { %585 = vst [vmem:[%s1106_s18 + $0xb0] sm:$0xff] %v525_v39  ;;  %567 = vst [vmem:[%s1106_s18 + $0x20] sm:$0xff] %v453_v40  ;;  %v528_v47 = vadd.f32 %v805_v45, %v1101_v18  ;;  %v456_v48 = vadd.f32 %v1101_v18, %v455_v46  ;;  %v519_v49 = vpop.f32.mrb[7].mxu1 }
  0xfb   : > { %583 = vst [vmem:[%s1106_s18 + $0xa0] sm:$0xff] %v517_v43  ;;  %570 = vst [vmem:[%s1106_s18 + $0x38] sm:$0xff] %v464_v44  ;;  %v520_v50 = vadd.f32 %v1101_v18, %v519_v49 }
  0xfc   : > { %586 = vst [vmem:[%s1106_s18 + $0xb8] sm:$0xff] %v528_v47  ;;  %568 = vst [vmem:[%s1106_s18 + $0x28] sm:$0xff] %v456_v48 }
  0xfd   : > { %584 = vst [vmem:[%s1106_s18 + $0xa8] sm:$0xff] %v520_v50 }
  0xfe   : > { %v792_v51 = vpop.f32.mrb[8].mxu0 }
  0xff   : > { %v477_v52 = vadd.f32 %v792_v51, %v1101_v18  ;;  %v808_v53 = vpop.f32.mrb[8].mxu1  ;;  %v468_v54 = vpop.f32.mrb[9].mxu0 }
 0x100   : > { %v541_v55 = vadd.f32 %v808_v53, %v1101_v18  ;;  %v469_v56 = vadd.f32 %v1101_v18, %v468_v54  ;;  %v532_v57 = vpop.f32.mrb[9].mxu1  ;;  %v793_v58 = vpop.f32.mrb[10].mxu0 }
 0x101   : > { %573 = vst [vmem:[%s1106_s18 + $0x50] sm:$0xff] %v477_v52  ;;  %v533_v59 = vadd.f32 %v1101_v18, %v532_v57  ;;  %v480_v60 = vadd.f32 %v793_v58, %v1101_v18  ;;  %v809_v61 = vpop.f32.mrb[10].mxu1  ;;  %v471_v62 = vpop.f32.mrb[11].mxu0 }
 0x102   : > { %589 = vst [vmem:[%s1106_s18 + $0xd0] sm:$0xff] %v541_v55  ;;  %571 = vst [vmem:[%s1106_s18 + $0x40] sm:$0xff] %v469_v56  ;;  %v544_v63 = vadd.f32 %v809_v61, %v1101_v18  ;;  %v472_v0 = vadd.f32 %v1101_v18, %v471_v62  ;;  %v535_v1 = vpop.f32.mrb[11].mxu1 }
 0x103   : > { %587 = vst [vmem:[%s1106_s18 + $0xc0] sm:$0xff] %v533_v59  ;;  %574 = vst [vmem:[%s1106_s18 + $0x58] sm:$0xff] %v480_v60  ;;  %v536_v2 = vadd.f32 %v1101_v18, %v535_v1 }
 0x104   : > { %590 = vst [vmem:[%s1106_s18 + $0xd8] sm:$0xff] %v544_v63  ;;  %572 = vst [vmem:[%s1106_s18 + $0x48] sm:$0xff] %v472_v0 }
 0x105   : > { %588 = vst [vmem:[%s1106_s18 + $0xc8] sm:$0xff] %v536_v2 }
 0x106   : > { %v796_v3 = vpop.f32.mrb[12].mxu0 }
 0x107   : > { %v493_v4 = vadd.f32 %v796_v3, %v1101_v18  ;;  %v812_v5 = vpop.f32.mrb[12].mxu1  ;;  %v484_v6 = vpop.f32.mrb[13].mxu0 }
 0x108   : > { %v557_v7 = vadd.f32 %v812_v5, %v1101_v18  ;;  %v485_v8 = vadd.f32 %v1101_v18, %v484_v6  ;;  %v548_v9 = vpop.f32.mrb[13].mxu1  ;;  %v797_v10 = vpop.f32.mrb[14].mxu0 }
 0x109   : > { %577 = vst [vmem:[%s1106_s18 + $0x70] sm:$0xff] %v493_v4  ;;  %v549_v11 = vadd.f32 %v1101_v18, %v548_v9  ;;  %v496_v12 = vadd.f32 %v797_v10, %v1101_v18  ;;  %v813_v13 = vpop.f32.mrb[14].mxu1  ;;  %v487_v14 = vpop.f32.mrb[15].mxu0 }
 0x10a   : > { %593 = vst [vmem:[%s1106_s18 + $0xf0] sm:$0xff] %v557_v7  ;;  %575 = vst [vmem:[%s1106_s18 + $0x60] sm:$0xff] %v485_v8  ;;  %v560_v15 = vadd.f32 %v813_v13, %v1101_v18  ;;  %v488_v16 = vadd.f32 %v1101_v18, %v487_v14  ;;  %v551_v17 = vpop.f32.mrb[15].mxu1 }
 0x10b   : > { %591 = vst [vmem:[%s1106_s18 + $0xe0] sm:$0xff] %v549_v11  ;;  %578 = vst [vmem:[%s1106_s18 + $0x78] sm:$0xff] %v496_v12  ;;  %v552_v19 = vadd.f32 %v1101_v18, %v551_v17 }
 0x10c   : > { %594 = vst [vmem:[%s1106_s18 + $0xf8] sm:$0xff] %v560_v15  ;;  %576 = vst [vmem:[%s1106_s18 + $0x68] sm:$0xff] %v488_v16 }
 0x10d   : > { %592 = vst [vmem:[%s1106_s18 + $0xe8] sm:$0xff] %v552_v19 }
 0x10e   : > { %906 = shalt.err (!%p903_p5)
}
 0x10f   : > { %s907_s5 = scalar_lea.hbm %s1168_s26, 4096  ;;  %s911_s8 = scalar_lea.hbm %s1229_s3, 16384 }
 0x110   : > { %p908_p6 = scmp.ne.s32.totalorder %s1168_s26, %s907_s5  ;;  %p912_p10 = scmp.lt.u32.totalorder %s1168_s26, %s1229_s3 }
 0x111   : > { %p913_p11 = scmp.lt.u32.totalorder %s911_s8, %s907_s5  ;;  %p915_p13 = scmp.lt.u32.totalorder %s907_s5, %s1168_s26 }
 0x112   : > { %p909_p7 = pnand %p908_p6, %p1036_p4 }
 0x113   : > { %p914_p12 = por %p913_p11, %p912_p10 }
 0x114   : > { %p910_p9 = pneg %p909_p7 }
 0x115   : > { %p916_p0 = por %p915_p13, %p914_p12 }
 0x117   : > { %p917_p1 = pnand %p916_p0, %p910_p9 }
 0x119   : > { %920 = shalt.err (!%p917_p1)
}
 0x11a   : > { %s974_s11 = smov 128   ;;  %s975_s18 = smov 8  }
 0x11b   : > { %818 = dma.vmem_to_hbm [thread:$0]  (%p1036_p4), %s1170_s21, 4096, %s1168_s26, %s1180_s27, %s974_s11, %s974_s11, %s975_s18  }
 0x11c PF: > { %p824_p2 = scmp.ge.s32.totalorder %s971_s17, 2  ;;  %s625_s19 = sand.u32 1, %s951_s12  }
 0x11d   : > { %s626_s15 = scalar_lea.sflag [#allocation3], %s625_s19 }
 0x11e   : > { %p821_p3 = pnand %p824_p2, %p1043_p8 }
 0x120   : > { %946 = dma.done.wait (!%p821_p3), %s626_s15, 4096  }
 0x121   : > { %948 = vsyncadd (!%p821_p3), %s626_s15, 4294963200  ;;  %s16_s17 = sadd.s32 1, %s971_s17   ;;  %s1232_s12 = smov %s955_s13 }
 0x122   : > { %p13_p5 = scmp.ge.s32.totalorder %s16_s17, 6   ;;  %s1233_s13 = smov %s959_s14 }
 0x123   : > { %s1234_s14 = smov %s1049_s25  ;;  %s1235_s15 = smov %s967_s16 }
 0x124   : > { %s1236_s16 = smov %s1238_s20  ;;  %15 = sbr.rel (!%p13_p5) target bundleno = 4 (0x4), region = 73 }
 0x12b   :  { %631 = vsyncpa [#allocation3], 1 }
 0x12c   :  { %633 = vsyncpa [#allocation3 + $0x1], 1 }

</bundles_post_ra>
